<compile_context>
chip_gen: v5e
topology: v5e:2x2
jax: 0.10.0
libtpu: 0.0.40
codegen_flags: <defaults>
</compile_context>

<pallas_src>
import jax
import jax.numpy as jnp
from jax.experimental import pallas as pl
from jax.experimental.pallas import tpu as pltpu


HIDDEN = 768
H1 = 64
N_CLASSES = 2
N_PAD = 128          # lane-dense padded class axis
PAD_NEG = -1e30      # bias for padded class columns -> exp underflows to 0


def head_kernel(x_ref, w1_ref, b1_ref, w2_ref, b2_ref,
                w3_ref, b3_ref, w4_ref, b4_ref, o_ref):
    """One (TB, 768) batch tile of the MLP head + LogSoftmax (128-padded)."""
    # Cast to bf16 in VMEM (no-op if producer already emitted bf16).
    x = x_ref[...].astype(jnp.bfloat16)                               # (TB, 768)
    w1 = w1_ref[...].astype(jnp.bfloat16)                             # (768, 64)

    h = jnp.dot(x, w1, preferred_element_type=jnp.float32) + b1_ref[...]
    h = jnp.maximum(h, 0.0)                                           # (TB, 64)

    h = jnp.dot(h, w2_ref[...], preferred_element_type=jnp.float32) + b2_ref[...]
    h = jnp.maximum(h, 0.0)                                           # (TB, 64)

    h = jnp.dot(h, w3_ref[...], preferred_element_type=jnp.float32) + b3_ref[...]
    h = jnp.maximum(h, 0.0)                                           # (TB, 64)

    # Padded final layer: real classes in columns [0, 2), padding columns get
    # logits ~ -1e30 so they contribute exactly 0 to the softmax denominator.
    logits = jnp.dot(h, w4_ref[...], preferred_element_type=jnp.float32) + b4_ref[...]
    m = jnp.max(logits, axis=1, keepdims=True)
    z = logits - m
    lse = jnp.log(jnp.sum(jnp.exp(z), axis=1, keepdims=True))
    # Single contiguous, unmasked (TB, 128) store per tile (lane-dense).
    o_ref[...] = (z - lse).astype(o_ref.dtype)


def _round_up(x, m):
    return ((x + m - 1) // m) * m


def bert_arch_head(cls_hs, params, *, max_tile=4096):
    """Run the Pallas kernel for the classification head.

    Batch is tiled into TB-row blocks (TB always a multiple of 16 for bf16
    sublane packing).  When the batch would fit in a single tile it is still
    split into >=2 grid steps so both v7x TensorCores are used.  Weights are
    VMEM-resident across grid steps; the class axis is padded to 128 lanes for
    an unmasked output store and sliced back to 2 in the wrapper.
    """
    B = cls_hs.shape[0]
    (w1, b1, w2, b2, w3, b3, w4, b4) = params

    # Pad fc4 to 128 output lanes (zeros for weights, -1e30 for bias).
    w4p = jnp.zeros((H1, N_PAD), jnp.float32).at[:, :N_CLASSES].set(w4)
    b4p = jnp.full((1, N_PAD), PAD_NEG, jnp.float32).at[:, :N_CLASSES].set(b4)

    # Tile sizing: multiple of 16, capped by max_tile, and >=2 grid steps when
    # the batch is large enough (megacore on v7x).
    max_tile = max(16, (max_tile // 16) * 16)
    tb_half = max(16, _round_up((B + 1) // 2, 16))
    TB = min(max_tile, tb_half)
    grid = (pl.cdiv(B, TB),)

    const = lambda i: (0, 0)          # weights/biases: fetched once, stay resident

    x_itemsize = jnp.dtype(cls_hs.dtype).itemsize
    weight_bytes = sum(int(a.size) * a.dtype.itemsize
                       for a in (w1, b1, w2, b2, w3, b3, w4p, b4p))
    cost = pl.CostEstimate(
        flops=2 * B * (HIDDEN * H1 + H1 * H1 + H1 * H1 + H1 * N_PAD),
        transcendentals=B * (N_PAD + 1),
        bytes_accessed=B * HIDDEN * x_itemsize + weight_bytes + B * N_PAD * 4,
    )

    out_padded = pl.pallas_call(
        head_kernel,
        out_shape=jax.ShapeDtypeStruct((B, N_PAD), jnp.float32),
        grid=grid,
        in_specs=[
            pl.BlockSpec((TB, HIDDEN), lambda i: (i, 0)),     # streamed activation
            pl.BlockSpec((HIDDEN, H1), const),                # w1 (resident)
            pl.BlockSpec((1, H1), const),                     # b1
            pl.BlockSpec((H1, H1), const),                    # w2
            pl.BlockSpec((1, H1), const),                     # b2
            pl.BlockSpec((H1, H1), const),                    # w3
            pl.BlockSpec((1, H1), const),                     # b3
            pl.BlockSpec((H1, N_PAD), const),                 # w4 (padded to 128)
            pl.BlockSpec((1, N_PAD), const),                  # b4 (padded to 128)
        ],
        out_specs=pl.BlockSpec((TB, N_PAD), lambda i: (i, 0)),
        compiler_params=pltpu.CompilerParams(
            dimension_semantics=("parallel",),                # shard batch across TCs (v7x)
            vmem_limit_bytes=48 << 20,                        # TB=4096 f32 double-buffer fits
        ),
        cost_estimate=cost,
    )(cls_hs, w1, b1, w2, b2, w3, b3, w4p, b4p)

    return out_padded[:, :N_CLASSES]


def make_params(key):
    """Deterministic synthetic parameters matching the nn.Linear shapes."""
    ks = jax.random.split(key, 8)
    def lin(kw, kb, fan_in, fan_out):
        bound = 1.0 / jnp.sqrt(fan_in)
        w = jax.random.uniform(kw, (fan_in, fan_out), jnp.float32, -bound, bound)
        b = jax.random.uniform(kb, (1, fan_out), jnp.float32, -bound, bound)
        return w, b
    w1, b1 = lin(ks[0], ks[1], HIDDEN, H1)
    w2, b2 = lin(ks[2], ks[3], H1, H1)
    w3, b3 = lin(ks[4], ks[5], H1, H1)
    w4, b4 = lin(ks[6], ks[7], H1, N_CLASSES)
    return (w1, b1, w2, b2, w3, b3, w4, b4)


def fake_bert_pooled_output(sent_id, mask, key, out_dtype=jnp.bfloat16):
    """Deterministic stand-in for `_, cls_hs = bert(sent_id, attention_mask=mask)`.

    Plain-JAX glue: embedding lookup -> masked mean pool -> tanh pooler.
    Emits `out_dtype` (bf16 by default) so the downstream Pallas head streams
    half the HBM bytes with no separate wrapper-side cast pass.
    """
    vocab = 32
    k_emb, k_pool = jax.random.split(key)
    emb_table = jax.random.normal(k_emb, (vocab, HIDDEN), jnp.float32) * 0.02
    w_pool = jax.random.normal(k_pool, (HIDDEN, HIDDEN), jnp.float32) * 0.02

    emb = emb_table[sent_id]                                  # (B, S, 768)
    m = mask.astype(jnp.float32)[..., None]                   # (B, S, 1)
    pooled = (emb * m).sum(axis=1) / jnp.maximum(m.sum(axis=1), 1.0)
    return jnp.tanh(pooled @ w_pool).astype(out_dtype)        # (B, 768)


def bert_arch_forward(sent_id, mask, params, bert_key):
    cls_hs = fake_bert_pooled_output(sent_id, mask, bert_key)
    return bert_arch_head(cls_hs, params)


def reference_head(cls_hs, params):
    """Pure-JAX reference of the head, mirroring the kernel's in-kernel bf16 cast."""
    (w1, b1, w2, b2, w3, b3, w4, b4) = params
    x = cls_hs.astype(jnp.bfloat16)
    h = jnp.maximum(jnp.dot(x, w1.astype(jnp.bfloat16),
                            preferred_element_type=jnp.float32) + b1, 0.0)
    h = jnp.maximum(h @ w2 + b2, 0.0)
    h = jnp.maximum(h @ w3 + b3, 0.0)
    logits = h @ w4 + b4
    return jax.nn.log_softmax(logits, axis=1)


def reference_forward(sent_id, mask, params, bert_key):
    cls_hs = fake_bert_pooled_output(sent_id, mask, bert_key)
    return reference_head(cls_hs, params)


if __name__ == "__main__":
    key = jax.random.PRNGKey(0)
    k_param, k_bert, k_ids, k_mask, k_big = jax.random.split(key, 5)

    B, S = 2, 8
    sent_id = jax.random.randint(k_ids, (B, S), 0, 32, dtype=jnp.int32)
    mask = (jax.random.uniform(k_mask, (B, S)) > 0.2).astype(jnp.int32)

    params = make_params(k_param)

    # Full forward (stand-in encoder emitting bf16 + Pallas head), small batch.
    out = bert_arch_forward(sent_id, mask, params, k_bert)
    out = jax.block_until_ready(out)
    ref = reference_forward(sent_id, mask, params, k_bert)
    assert out.shape == (B, N_CLASSES)
    assert jnp.allclose(out, ref, atol=1e-4, rtol=1e-4), "mismatch vs reference (B=2)"

    # Exercise the multi-step tiled grid (grid > 1, ragged last tile, f32 input).
    B2 = 200
    cls_big = jax.random.normal(k_big, (B2, HIDDEN), jnp.float32) * 0.5
    out_big = jax.block_until_ready(bert_arch_head(cls_big, params, max_tile=64))
    ref_big = reference_head(cls_big, params)
    assert out_big.shape == (B2, N_CLASSES)
    assert jnp.allclose(out_big, ref_big, atol=1e-4, rtol=1e-4), "mismatch (tiled)"

    # Exercise the default-tile path too (>=2 grid steps from the megacore split).
    out_def = jax.block_until_ready(bert_arch_head(cls_big, params))
    assert jnp.allclose(out_def, ref_big, atol=1e-4, rtol=1e-4), "mismatch (default tile)"

    print("KERNEL_OK")
</pallas_src>

<mosaic_0001>
module attributes {stable_mosaic.version = 11 : i64} {
  func.func @head_kernel(%arg0: i32, %arg1: memref<16x768xbf16, #tpu.memory_space<vmem>>, %arg2: memref<768x64xf32, #tpu.memory_space<vmem>>, %arg3: memref<1x64xf32, #tpu.memory_space<vmem>>, %arg4: memref<64x64xf32, #tpu.memory_space<vmem>>, %arg5: memref<1x64xf32, #tpu.memory_space<vmem>>, %arg6: memref<64x64xf32, #tpu.memory_space<vmem>>, %arg7: memref<1x64xf32, #tpu.memory_space<vmem>>, %arg8: memref<64x128xf32, #tpu.memory_space<vmem>>, %arg9: memref<1x128xf32, #tpu.memory_space<vmem>>, %arg10: memref<16x128xf32, #tpu.memory_space<vmem>>) attributes {dimension_semantics = [#tpu.dimension_semantics<parallel>], iteration_bounds = array<i64: 1>, scalar_prefetch = 0 : i64, scratch_operands = 0 : i64, tpu.core_type = #tpu.core_type<tc>, window_params = [{transform_indices = @transform_0, window_bounds = array<i64: 16, 768>}, {pipeline_mode = #tpu.pipeline_mode<synchronous>, transform_indices = @transform_1, window_bounds = array<i64: 768, 64>}, {pipeline_mode = #tpu.pipeline_mode<synchronous>, transform_indices = @transform_2, window_bounds = array<i64: 1, 64>}, {pipeline_mode = #tpu.pipeline_mode<synchronous>, transform_indices = @transform_3, window_bounds = array<i64: 64, 64>}, {pipeline_mode = #tpu.pipeline_mode<synchronous>, transform_indices = @transform_4, window_bounds = array<i64: 1, 64>}, {pipeline_mode = #tpu.pipeline_mode<synchronous>, transform_indices = @transform_5, window_bounds = array<i64: 64, 64>}, {pipeline_mode = #tpu.pipeline_mode<synchronous>, transform_indices = @transform_6, window_bounds = array<i64: 1, 64>}, {pipeline_mode = #tpu.pipeline_mode<synchronous>, transform_indices = @transform_7, window_bounds = array<i64: 64, 128>}, {pipeline_mode = #tpu.pipeline_mode<synchronous>, transform_indices = @transform_8, window_bounds = array<i64: 1, 128>}, {transform_indices = @transform_9, window_bounds = array<i64: 16, 128>}]} {
    %c0 = arith.constant 0 : index
    %c0_0 = arith.constant 0 : index
    %0 = vector.load %arg1[%c0, %c0_0] : memref<16x768xbf16, #tpu.memory_space<vmem>>, vector<16x768xbf16>
    %c0_1 = arith.constant 0 : index
    %c0_2 = arith.constant 0 : index
    %1 = vector.load %arg2[%c0_1, %c0_2] : memref<768x64xf32, #tpu.memory_space<vmem>>, vector<768x64xf32>
    %2 = arith.truncf %1 : vector<768x64xf32> to vector<768x64xbf16>
    %cst = arith.constant dense<0.000000e+00> : vector<16x64xf32>
    %3 = tpu.matmul %0, %2, %cst {dimension_numbers = #tpu.dot_dimension_numbers<[1], [0], [0], [1], [0, 0, 1, 1], [], []>} : vector<16x768xbf16>, vector<768x64xbf16>, vector<16x64xf32> -> vector<16x64xf32>
    %c0_3 = arith.constant 0 : index
    %c0_4 = arith.constant 0 : index
    %4 = vector.load %arg3[%c0_3, %c0_4] : memref<1x64xf32, #tpu.memory_space<vmem>>, vector<1x64xf32>
    %5 = vector.broadcast %4 : vector<1x64xf32> to vector<16x64xf32>
    %6 = arith.addf %3, %5 : vector<16x64xf32>
    %cst_5 = arith.constant 0.000000e+00 : f32
    %7 = vector.broadcast %cst_5 : f32 to vector<16x64xf32>
    %8 = arith.maximumf %6, %7 : vector<16x64xf32>
    %c0_6 = arith.constant 0 : index
    %c0_7 = arith.constant 0 : index
    %9 = vector.load %arg4[%c0_6, %c0_7] : memref<64x64xf32, #tpu.memory_space<vmem>>, vector<64x64xf32>
    %cst_8 = arith.constant dense<0.000000e+00> : vector<16x64xf32>
    %10 = tpu.matmul %8, %9, %cst_8 {dimension_numbers = #tpu.dot_dimension_numbers<[1], [0], [0], [1], [0, 0, 1, 1], [], []>} : vector<16x64xf32>, vector<64x64xf32>, vector<16x64xf32> -> vector<16x64xf32>
    %c0_9 = arith.constant 0 : index
    %c0_10 = arith.constant 0 : index
    %11 = vector.load %arg5[%c0_9, %c0_10] : memref<1x64xf32, #tpu.memory_space<vmem>>, vector<1x64xf32>
    %12 = vector.broadcast %11 : vector<1x64xf32> to vector<16x64xf32>
    %13 = arith.addf %10, %12 : vector<16x64xf32>
    %cst_11 = arith.constant 0.000000e+00 : f32
    %14 = vector.broadcast %cst_11 : f32 to vector<16x64xf32>
    %15 = arith.maximumf %13, %14 : vector<16x64xf32>
    %c0_12 = arith.constant 0 : index
    %c0_13 = arith.constant 0 : index
    %16 = vector.load %arg6[%c0_12, %c0_13] : memref<64x64xf32, #tpu.memory_space<vmem>>, vector<64x64xf32>
    %cst_14 = arith.constant dense<0.000000e+00> : vector<16x64xf32>
    %17 = tpu.matmul %15, %16, %cst_14 {dimension_numbers = #tpu.dot_dimension_numbers<[1], [0], [0], [1], [0, 0, 1, 1], [], []>} : vector<16x64xf32>, vector<64x64xf32>, vector<16x64xf32> -> vector<16x64xf32>
    %c0_15 = arith.constant 0 : index
    %c0_16 = arith.constant 0 : index
    %18 = vector.load %arg7[%c0_15, %c0_16] : memref<1x64xf32, #tpu.memory_space<vmem>>, vector<1x64xf32>
    %19 = vector.broadcast %18 : vector<1x64xf32> to vector<16x64xf32>
    %20 = arith.addf %17, %19 : vector<16x64xf32>
    %cst_17 = arith.constant 0.000000e+00 : f32
    %21 = vector.broadcast %cst_17 : f32 to vector<16x64xf32>
    %22 = arith.maximumf %20, %21 : vector<16x64xf32>
    %c0_18 = arith.constant 0 : index
    %c0_19 = arith.constant 0 : index
    %23 = vector.load %arg8[%c0_18, %c0_19] : memref<64x128xf32, #tpu.memory_space<vmem>>, vector<64x128xf32>
    %cst_20 = arith.constant dense<0.000000e+00> : vector<16x128xf32>
    %24 = tpu.matmul %22, %23, %cst_20 {dimension_numbers = #tpu.dot_dimension_numbers<[1], [0], [0], [1], [0, 0, 1, 1], [], []>} : vector<16x64xf32>, vector<64x128xf32>, vector<16x128xf32> -> vector<16x128xf32>
    %c0_21 = arith.constant 0 : index
    %c0_22 = arith.constant 0 : index
    %25 = vector.load %arg9[%c0_21, %c0_22] : memref<1x128xf32, #tpu.memory_space<vmem>>, vector<1x128xf32>
    %26 = vector.broadcast %25 : vector<1x128xf32> to vector<16x128xf32>
    %27 = arith.addf %24, %26 : vector<16x128xf32>
    %cst_23 = arith.constant dense<0xFF800000> : vector<16xf32>
    %28 = vector.multi_reduction <maximumf>, %27, %cst_23 [1] : vector<16x128xf32> to vector<16xf32>
    %29 = vector.shape_cast %28 : vector<16xf32> to vector<16x1xf32>
    %30 = vector.broadcast %29 : vector<16x1xf32> to vector<16x128xf32>
    %31 = arith.subf %27, %30 : vector<16x128xf32>
    %32 = math.exp %31 : vector<16x128xf32>
    %cst_24 = arith.constant dense<0.000000e+00> : vector<16xf32>
    %33 = vector.multi_reduction <add>, %32, %cst_24 [1] : vector<16x128xf32> to vector<16xf32>
    %34 = vector.shape_cast %33 : vector<16xf32> to vector<16x1xf32>
    %35 = math.log %34 : vector<16x1xf32>
    %36 = vector.broadcast %35 : vector<16x1xf32> to vector<16x128xf32>
    %37 = arith.subf %31, %36 : vector<16x128xf32>
    %c0_25 = arith.constant 0 : index
    %c0_26 = arith.constant 0 : index
    %38 = vector.load %arg10[%c0_25, %c0_26] : memref<16x128xf32, #tpu.memory_space<vmem>>, vector<16x128xf32>
    tpu.vector_store %arg10[%c0_25, %c0_26], %37 {strides = array<i32>} : memref<16x128xf32, #tpu.memory_space<vmem>>, vector<16x128xf32>,
    return
  }
  func.func @transform_0(%arg0: i32) -> (i32, i32) {
    %c0_i32 = arith.constant 0 : i32
    %c0_i32_0 = arith.constant 0 : i32
    return %arg0, %c0_i32 : i32, i32
  }
  func.func @transform_1(%arg0: i32) -> (i32, i32) {
    %c0_i32 = arith.constant 0 : i32
    %c0_i32_0 = arith.constant 0 : i32
    %c0_i32_1 = arith.constant 0 : i32
    return %c0_i32, %c0_i32_0 : i32, i32
  }
  func.func @transform_2(%arg0: i32) -> (i32, i32) {
    %c0_i32 = arith.constant 0 : i32
    %c0_i32_0 = arith.constant 0 : i32
    %c0_i32_1 = arith.constant 0 : i32
    return %c0_i32, %c0_i32_0 : i32, i32
  }
  func.func @transform_3(%arg0: i32) -> (i32, i32) {
    %c0_i32 = arith.constant 0 : i32
    %c0_i32_0 = arith.constant 0 : i32
    %c0_i32_1 = arith.constant 0 : i32
    return %c0_i32, %c0_i32_0 : i32, i32
  }
  func.func @transform_4(%arg0: i32) -> (i32, i32) {
    %c0_i32 = arith.constant 0 : i32
    %c0_i32_0 = arith.constant 0 : i32
    %c0_i32_1 = arith.constant 0 : i32
    return %c0_i32, %c0_i32_0 : i32, i32
  }
  func.func @transform_5(%arg0: i32) -> (i32, i32) {
    %c0_i32 = arith.constant 0 : i32
    %c0_i32_0 = arith.constant 0 : i32
    %c0_i32_1 = arith.constant 0 : i32
    return %c0_i32, %c0_i32_0 : i32, i32
  }
  func.func @transform_6(%arg0: i32) -> (i32, i32) {
    %c0_i32 = arith.constant 0 : i32
    %c0_i32_0 = arith.constant 0 : i32
    %c0_i32_1 = arith.constant 0 : i32
    return %c0_i32, %c0_i32_0 : i32, i32
  }
  func.func @transform_7(%arg0: i32) -> (i32, i32) {
    %c0_i32 = arith.constant 0 : i32
    %c0_i32_0 = arith.constant 0 : i32
    %c0_i32_1 = arith.constant 0 : i32
    return %c0_i32, %c0_i32_0 : i32, i32
  }
  func.func @transform_8(%arg0: i32) -> (i32, i32) {
    %c0_i32 = arith.constant 0 : i32
    %c0_i32_0 = arith.constant 0 : i32
    %c0_i32_1 = arith.constant 0 : i32
    return %c0_i32, %c0_i32_0 : i32, i32
  }
  func.func @transform_9(%arg0: i32) -> (i32, i32) {
    %c0_i32 = arith.constant 0 : i32
    %c0_i32_0 = arith.constant 0 : i32
    return %arg0, %c0_i32 : i32, i32
  }
}

</mosaic_0001>

<bundles_post_ra>
// kernel: tpu_custom_call.1
= control target key start
LH: loop header
LB: loop body
LE: loop exit
PB: predicated region body
PF: predicated region fallthrough
CT: control target
= control target key end

     0   :  { %14 = vsyncpa [#allocation3], 0  ;;  %vm322_vm0 = vcmask 523264   ;;  %s983_s0 = inlined_call_operand.vmem [shape: bf16[2,768], index: 0, kind: input, shape index: {}]   ;;  %s984_s1 = inlined_call_operand.vmem [shape: f32[768,64], index: 1, kind: input, shape index: {}]   ;;  %s985_s2 = inlined_call_operand.vmem [shape: f32[1,64], index: 2, kind: input, shape index: {}]   ;;  %s986_s3 = inlined_call_operand.vmem [shape: f32[64,64], index: 3, kind: input, shape index: {}]   ;;  %s987_s4 = inlined_call_operand.vmem [shape: f32[1,64], index: 4, kind: input, shape index: {}]   ;;  %s988_s5 = inlined_call_operand.vmem [shape: f32[64,64], index: 5, kind: input, shape index: {}]   ;;  %s989_s6 = inlined_call_operand.vmem [shape: f32[1,64], index: 6, kind: input, shape index: {}]   ;;  %s990_s7 = inlined_call_operand.vmem [shape: f32[64,128], index: 7, kind: input, shape index: {}]   ;;  %s991_s8 = inlined_call_operand.vmem [shape: f32[1,128], index: 8, kind: input, shape index: {}]   ;;  %s992_s9 = inlined_call_operand.hbm [shape: f32[2,128], index: 9, kind: output, shape index: {}]  }
   0x1   :  { %v55_v0 = vld [vmem:[%s984_s1 + $0x70] sm:$0xff]  ;;  %v56_v1 = vld [vmem:[%s984_s1 + $0x78] sm:$0xff]  ;;  %v53_v8 = vld [vmem:[%s984_s1 + $0x60] sm:$0xff] }
   0x2   :  { %v144_v2 = vpack.c.bf16 %v56_v1, %v55_v0  ;;  %v71_v3 = vld [vmem:[%s984_s1 + $0xf0] sm:$0xff]  ;;  %v72_v4 = vld [vmem:[%s984_s1 + $0xf8] sm:$0xff]  ;;  %v54_v9 = vld [vmem:[%s984_s1 + $0x68] sm:$0xff] }
   0x3   :  { %v87_v5 = vld [vmem:[%s984_s1 + $0x170] sm:$0xff]  ;;  %v152_v6 = vpack.c.bf16 %v72_v4, %v71_v3  ;;  %v88_v7 = vld [vmem:[%s984_s1 + $0x178] sm:$0xff]  ;;  %v143_v11 = vpack.c.bf16 %v54_v9, %v53_v8  ;;  %v69_v12 = vld [vmem:[%s984_s1 + $0xe0] sm:$0xff] }
   0x4   :  { %224 = vmatpush.bf16.msra.mxu0 %v144_v2  ;;  %v160_v10 = vpack.c.bf16 %v88_v7, %v87_v5  ;;  %v70_v13 = vld [vmem:[%s984_s1 + $0xe8] sm:$0xff]  ;;  %v103_v14 = vld [vmem:[%s984_s1 + $0x1f0] sm:$0xff]  ;;  %v104_v16 = vld [vmem:[%s984_s1 + $0x1f8] sm:$0xff] }
   0x5   :  { %238 = vmatpush.bf16.msra.mxu1 %v152_v6  ;;  %v151_v15 = vpack.c.bf16 %v70_v13, %v69_v12  ;;  %v85_v17 = vld [vmem:[%s984_s1 + $0x160] sm:$0xff]  ;;  %v86_v18 = vld [vmem:[%s984_s1 + $0x168] sm:$0xff]  ;;  %v168_v19 = vpack.c.bf16 %v104_v16, %v103_v14  ;;  %v51_v21 = vld [vmem:[%s984_s1 + $0x50] sm:$0xff] }
   0x6   :  { %252 = vmatpush.bf16.msra.mxu2 %v160_v10  ;;  %v159_v20 = vpack.c.bf16 %v86_v18, %v85_v17  ;;  %v52_v22 = vld [vmem:[%s984_s1 + $0x58] sm:$0xff]  ;;  %v67_v23 = vld [vmem:[%s984_s1 + $0xd0] sm:$0xff]  ;;  %v101_v25 = vld [vmem:[%s984_s1 + $0x1e0] sm:$0xff] }
   0x7   :  { %v68_v24 = vld [vmem:[%s984_s1 + $0xd8] sm:$0xff]  ;;  %v102_v26 = vld [vmem:[%s984_s1 + $0x1e8] sm:$0xff]  ;;  %266 = vmatpush.bf16.msra.mxu3 %v168_v19  ;;  %v142_v27 = vpack.c.bf16 %v52_v22, %v51_v21  ;;  %v83_v29 = vld [vmem:[%s984_s1 + $0x150] sm:$0xff] }
   0x8   :  { %225 = vmatpush.bf16.msra.mxu0 %v143_v11  ;;  %v167_v28 = vpack.c.bf16 %v102_v26, %v101_v25  ;;  %v84_v30 = vld [vmem:[%s984_s1 + $0x158] sm:$0xff]  ;;  %v150_v31 = vpack.c.bf16 %v68_v24, %v67_v23  ;;  %v49_v32 = vld [vmem:[%s984_s1 + $0x40] sm:$0xff]  ;;  %v50_v33 = vld [vmem:[%s984_s1 + $0x48] sm:$0xff] }
   0x9   :  { %239 = vmatpush.bf16.msra.mxu1 %v151_v15  ;;  %v65_v34 = vld [vmem:[%s984_s1 + $0xc0] sm:$0xff]  ;;  %v158_v35 = vpack.c.bf16 %v84_v30, %v83_v29  ;;  %v66_v36 = vld [vmem:[%s984_s1 + $0xc8] sm:$0xff]  ;;  %v99_v37 = vld [vmem:[%s984_s1 + $0x1d0] sm:$0xff]  ;;  %v141_v41 = vpack.c.bf16 %v50_v33, %v49_v32 }
   0xa   :  { %253 = vmatpush.bf16.msra.mxu2 %v159_v20  ;;  %v100_v38 = vld [vmem:[%s984_s1 + $0x1d8] sm:$0xff]  ;;  %v81_v39 = vld [vmem:[%s984_s1 + $0x140] sm:$0xff]  ;;  %v82_v40 = vld [vmem:[%s984_s1 + $0x148] sm:$0xff]  ;;  %v149_v44 = vpack.c.bf16 %v66_v36, %v65_v34 }
   0xb   :  { %267 = vmatpush.bf16.msra.mxu3 %v167_v28  ;;  %v166_v42 = vpack.c.bf16 %v100_v38, %v99_v37  ;;  %v47_v43 = vld [vmem:[%s984_s1 + $0x30] sm:$0xff]  ;;  %v48_v45 = vld [vmem:[%s984_s1 + $0x38] sm:$0xff]  ;;  %v97_v46 = vld [vmem:[%s984_s1 + $0x1c0] sm:$0xff]  ;;  %v157_v48 = vpack.c.bf16 %v82_v40, %v81_v39 }
   0xc   :  { %226 = vmatpush.bf16.msra.mxu0 %v142_v27  ;;  %v98_v47 = vld [vmem:[%s984_s1 + $0x1c8] sm:$0xff]  ;;  %v63_v49 = vld [vmem:[%s984_s1 + $0xb0] sm:$0xff]  ;;  %v64_v50 = vld [vmem:[%s984_s1 + $0xb8] sm:$0xff]  ;;  %v140_v53 = vpack.c.bf16 %v48_v45, %v47_v43 }
   0xd   :  { %240 = vmatpush.bf16.msra.mxu1 %v150_v31  ;;  %v79_v51 = vld [vmem:[%s984_s1 + $0x130] sm:$0xff]  ;;  %v80_v52 = vld [vmem:[%s984_s1 + $0x138] sm:$0xff]  ;;  %v165_v54 = vpack.c.bf16 %v98_v47, %v97_v46  ;;  %v45_v55 = vld [vmem:[%s984_s1 + $0x20] sm:$0xff]  ;;  %v148_v56 = vpack.c.bf16 %v64_v50, %v63_v49 }
   0xe   :  { %254 = vmatpush.bf16.msra.mxu2 %v158_v35  ;;  %v46_v57 = vld [vmem:[%s984_s1 + $0x28] sm:$0xff]  ;;  %v95_v58 = vld [vmem:[%s984_s1 + $0x1b0] sm:$0xff]  ;;  %v96_v59 = vld [vmem:[%s984_s1 + $0x1b8] sm:$0xff]  ;;  %v156_v60 = vpack.c.bf16 %v80_v52, %v79_v51 }
   0xf   :  { %268 = vmatpush.bf16.msra.mxu3 %v166_v42  ;;  %v61_v61 = vld [vmem:[%s984_s1 + $0xa0] sm:$0xff]  ;;  %v62_v62 = vld [vmem:[%s984_s1 + $0xa8] sm:$0xff]  ;;  %v139_v1 = vpack.c.bf16 %v46_v57, %v45_v55  ;;  %v164_v2 = vpack.c.bf16 %v96_v59, %v95_v58  ;;  %v43_v3 = vld [vmem:[%s984_s1 + $0x10] sm:$0xff] }
  0x10   :  { %227 = vmatpush.bf16.msra.mxu0 %v141_v41  ;;  %v77_v63 = vld [vmem:[%s984_s1 + $0x120] sm:$0xff]  ;;  %v78_v0 = vld [vmem:[%s984_s1 + $0x128] sm:$0xff]  ;;  %v147_v4 = vpack.c.bf16 %v62_v62, %v61_v61  ;;  %v44_v5 = vld [vmem:[%s984_s1 + $0x18] sm:$0xff] }
  0x11   :  { %241 = vmatpush.bf16.msra.mxu1 %v149_v44  ;;  %v93_v6 = vld [vmem:[%s984_s1 + $0x1a0] sm:$0xff]  ;;  %v94_v7 = vld [vmem:[%s984_s1 + $0x1a8] sm:$0xff]  ;;  %v155_v8 = vpack.c.bf16 %v78_v0, %v77_v63  ;;  %v59_v9 = vld [vmem:[%s984_s1 + $0x90] sm:$0xff]  ;;  %v138_v15 = vpack.c.bf16 %v44_v5, %v43_v3 }
  0x12   :  { %255 = vmatpush.bf16.msra.mxu2 %v157_v48  ;;  %v60_v10 = vld [vmem:[%s984_s1 + $0x98] sm:$0xff]  ;;  %v75_v11 = vld [vmem:[%s984_s1 + $0x110] sm:$0xff]  ;;  %v41_v13 = vld [vmem:[%s984_s1] sm:$0xff]  ;;  %v163_v16 = vpack.c.bf16 %v94_v7, %v93_v6 }
  0x13   :  { %269 = vmatpush.bf16.msra.mxu3 %v165_v54  ;;  %v76_v12 = vld [vmem:[%s984_s1 + $0x118] sm:$0xff]  ;;  %v42_v14 = vld [vmem:[%s984_s1 + $0x8] sm:$0xff]  ;;  %v57_v17 = vld [vmem:[%s984_s1 + $0x80] sm:$0xff]  ;;  %v146_v21 = vpack.c.bf16 %v60_v10, %v59_v9 }
  0x14   :  { %228 = vmatpush.bf16.msra.mxu0 %v140_v53  ;;  %v58_v18 = vld [vmem:[%s984_s1 + $0x88] sm:$0xff]  ;;  %v91_v19 = vld [vmem:[%s984_s1 + $0x190] sm:$0xff]  ;;  %v92_v20 = vld [vmem:[%s984_s1 + $0x198] sm:$0xff]  ;;  %v154_v25 = vpack.c.bf16 %v76_v12, %v75_v11  ;;  %v137_v32 = vpack.c.bf16 %v42_v14, %v41_v13 }
  0x15   :  { %242 = vmatpush.bf16.msra.mxu1 %v148_v56  ;;  %v119_v22 = vld [vmem:[%s984_s1 + $0x270] sm:$0xff]  ;;  %v120_v23 = vld [vmem:[%s984_s1 + $0x278] sm:$0xff]  ;;  %v33_v24 = vld [vmem:[%s983_s0] sm:$0x3f]  ;;  %v162_v33 = vpack.c.bf16 %v92_v20, %v91_v19  ;;  %v145_v35 = vpack.c.bf16 %v58_v18, %v57_v17 }
  0x16   :  { %256 = vmatpush.bf16.msra.mxu2 %v156_v60  ;;  %v135_v26 = vld [vmem:[%s984_s1 + $0x2f0] sm:$0xff]  ;;  %v136_v27 = vld [vmem:[%s984_s1 + $0x2f8] sm:$0xff]  ;;  %v34_v28 = vld [vmem:[%s983_s0 + $0x6] sm:$0x3f]  ;;  %190 = vst [vmem:[#allocation1] ss:$9 sm:$0xff] %v33_v24  ;;  %v176_v36 = vpack.c.bf16 %v120_v23, %v119_v22 }
  0x17   :  { %270 = vmatpush.bf16.msra.mxu3 %v164_v2  ;;  %v73_v29 = vld [vmem:[%s984_s1 + $0x100] sm:$0xff]  ;;  %v74_v30 = vld [vmem:[%s984_s1 + $0x108] sm:$0xff]  ;;  %v36_v34 = vld [vmem:[%s983_s0 + $0x12] sm:$0x3f]  ;;  %193 = vst [vmem:[#allocation1 + $0x1] ss:$9 sm:$0xff] %v34_v28  ;;  %v184_v40 = vpack.c.bf16 %v136_v27, %v135_v26 }
  0x18   :  { %229 = vmatpush.bf16.msra.mxu0 %v139_v1  ;;  %v35_v31 = vld [vmem:[%s983_s0 + $0xc] sm:$0x3f]  ;;  %v89_v37 = vld [vmem:[%s984_s1 + $0x180] sm:$0xff]  ;;  %v37_v39 = vld [vmem:[%s983_s0 + $0x18] sm:$0x3f]  ;;  %v153_v41 = vpack.c.bf16 %v74_v30, %v73_v29 }
  0x19   :  { %243 = vmatpush.bf16.msra.mxu1 %v147_v4  ;;  %v90_v38 = vld [vmem:[%s984_s1 + $0x188] sm:$0xff]  ;;  %v117_v42 = vld [vmem:[%s984_s1 + $0x260] sm:$0xff]  ;;  %196 = vst [vmem:[#allocation1 + $0x2] ss:$9 sm:$0xff] %v35_v31  ;;  %v115_v52 = vld [vmem:[%s984_s1 + $0x250] sm:$0xff] }
  0x1a   :  { %257 = vmatpush.bf16.msra.mxu2 %v155_v8  ;;  %v118_v43 = vld [vmem:[%s984_s1 + $0x268] sm:$0xff]  ;;  %v38_v44 = vld [vmem:[%s983_s0 + $0x1e] sm:$0x3f]  ;;  %199 = vst [vmem:[#allocation1 + $0x3] ss:$9 sm:$0xff] %v36_v34  ;;  %v161_v48 = vpack.c.bf16 %v90_v38, %v89_v37  ;;  %v131_v54 = vld [vmem:[%s984_s1 + $0x2d0] sm:$0xff] }
  0x1b   :  { %271 = vmatpush.bf16.msra.mxu3 %v163_v16  ;;  %v133_v45 = vld [vmem:[%s984_s1 + $0x2e0] sm:$0xff]  ;;  %v134_v46 = vld [vmem:[%s984_s1 + $0x2e8] sm:$0xff]  ;;  %202 = vst [vmem:[#allocation1 + $0x4] ss:$9 sm:$0xff] %v37_v39  ;;  %v175_v50 = vpack.c.bf16 %v118_v43, %v117_v42  ;;  %v116_v53 = vld [vmem:[%s984_s1 + $0x258] sm:$0xff] }
  0x1c   :  { %230 = vmatpush.bf16.msra.mxu0 %v138_v15  ;;  %v39_v47 = vld [vmem:[%s983_s0 + $0x24] sm:$0x3f]  ;;  %v40_v49 = vld [vmem:[%s983_s0 + $0x2a] sm:$0x3f]  ;;  %205 = vst [vmem:[#allocation1 + $0x5] ss:$9 sm:$0xff] %v38_v44  ;;  %v183_v51 = vpack.c.bf16 %v134_v46, %v133_v45  ;;  %v174_v56 = vpack.c.bf16 %v116_v53, %v115_v52 }
  0x1d   :  { %244 = vmatpush.bf16.msra.mxu1 %v146_v21  ;;  %208 = vst [vmem:[#allocation1 + $0x6] ss:$9 sm:$0xff] %v39_v47  ;;  %v132_v55 = vld [vmem:[%s984_s1 + $0x2d8] sm:$0xff]  ;;  %v113_v58 = vld [vmem:[%s984_s1 + $0x240] sm:$0xff]  ;;  %v114_v59 = vld [vmem:[%s984_s1 + $0x248] sm:$0xff] }
  0x1e   :  { %258 = vmatpush.bf16.msra.mxu2 %v154_v25  ;;  %211 = vst [vmem:[#allocation1 + $0x7] ss:$9 sm:$0xff] %v40_v49  ;;  %v182_v57 = vpack.c.bf16 %v132_v55, %v131_v54  ;;  %v129_v60 = vld [vmem:[%s984_s1 + $0x2c0] sm:$0xff]  ;;  %v130_v61 = vld [vmem:[%s984_s1 + $0x2c8] sm:$0xff]  ;;  %v173_v62 = vpack.c.bf16 %v114_v59, %v113_v58  ;;  %v111_v63 = vld [vmem:[%s984_s1 + $0x230] sm:$0xff] }
  0x1f   :  { %272 = vmatpush.bf16.msra.mxu3 %v162_v33  ;;  %v112_v0 = vld [vmem:[%s984_s1 + $0x238] sm:$0xff]  ;;  %v181_v4 = vpack.c.bf16 %v130_v61, %v129_v60  ;;  %v127_v6 = vld [vmem:[%s984_s1 + $0x2b0] sm:$0xff]  ;;  %v109_v10 = vld [vmem:[%s984_s1 + $0x220] sm:$0xff] }
  0x20   :  { %231 = vmatpush.bf16.msra.mxu0 %v137_v32  ;;  %v128_v7 = vld [vmem:[%s984_s1 + $0x2b8] sm:$0xff]  ;;  %v172_v8 = vpack.c.bf16 %v112_v0, %v111_v63  ;;  %v110_v11 = vld [vmem:[%s984_s1 + $0x228] sm:$0xff]  ;;  %v125_v12 = vld [vmem:[%s984_s1 + $0x2a0] sm:$0xff] }
  0x21   :  { %245 = vmatpush.bf16.msra.mxu1 %v145_v35  ;;  %v180_v9 = vpack.c.bf16 %v128_v7, %v127_v6  ;;  %v126_v13 = vld [vmem:[%s984_s1 + $0x2a8] sm:$0xff]  ;;  %v171_v14 = vpack.c.bf16 %v110_v11, %v109_v10  ;;  %v107_v16 = vld [vmem:[%s984_s1 + $0x210] sm:$0xff]  ;;  %v108_v17 = vld [vmem:[%s984_s1 + $0x218] sm:$0xff] }
  0x22   :  { %259 = vmatpush.bf16.msra.mxu2 %v153_v41  ;;  %v179_v15 = vpack.c.bf16 %v126_v13, %v125_v12  ;;  %v123_v18 = vld [vmem:[%s984_s1 + $0x290] sm:$0xff]  ;;  %v124_v19 = vld [vmem:[%s984_s1 + $0x298] sm:$0xff]  ;;  %v170_v20 = vpack.c.bf16 %v108_v17, %v107_v16  ;;  %v105_v22 = vld [vmem:[%s984_s1 + $0x200] sm:$0xff] }
  0x23   :  { %273 = vmatpush.bf16.msra.mxu3 %v161_v48  ;;  %v178_v21 = vpack.c.bf16 %v124_v19, %v123_v18  ;;  %v106_v23 = vld [vmem:[%s984_s1 + $0x208] sm:$0xff]  ;;  %v121_v24 = vld [vmem:[%s984_s1 + $0x280] sm:$0xff]  ;;  %v317_v30 = vld [vmem:[%s986_s3 + $0x38] sm:$0xff] }
  0x24   :  { %280 = vmatpush.bf16.msrb.mxu0 %v176_v36  ;;  %v122_v25 = vld [vmem:[%s984_s1 + $0x288] sm:$0xff]  ;;  %v169_v26 = vpack.c.bf16 %v106_v23, %v105_v22  ;;  %v316_v31 = vld [vmem:[%s986_s3 + $0x30] sm:$0xff]  ;;  %v314_v33 = vld [vmem:[%s986_s3 + $0x20] sm:$0xff] }
  0x25   :  { %294 = vmatpush.bf16.msrb.mxu1 %v184_v40  ;;  %v214_v1 = vld [vmem:[#allocation1 + $0x12] sm:$0xff]  ;;  %v212_v2 = vld [vmem:[#allocation1] sm:$0xff]  ;;  %v213_v5 = vld [vmem:[#allocation1 + $0x9] sm:$0xff]  ;;  %v177_v27 = vpack.c.bf16 %v122_v25, %v121_v24 }
  0x26   :  { %v215_v3 = vld [vmem:[#allocation1 + $0x1b] sm:$0xff]  ;;  %260 = vmatmul.bf16.vlgmr.msra.gmra.mxu2 %v214_v1  ;;  %232 = vmatmul.bf16.vlgmr.msra.gmra.mxu0 %v212_v2  ;;  %v216_v28 = vld [vmem:[#allocation1 + $0x24] sm:$0xff]  ;;  %v217_v29 = vld [vmem:[#allocation1 + $0x2d] sm:$0xff] }
  0x27   :  { %274 = vmatmul.bf16.vlgmr.msra.gmra.mxu3 %v215_v3  ;;  %246 = vmatmul.bf16.vlgmr.msra.gmra.mxu1 %v213_v5  ;;  %v315_v32 = vld [vmem:[%s986_s3 + $0x28] sm:$0xff]  ;;  %v313_v34 = vld [vmem:[%s986_s3 + $0x18] sm:$0xff]  ;;  %v312_v35 = vld [vmem:[%s986_s3 + $0x10] sm:$0xff] }
  0x28   :  { %281 = vmatpush.bf16.msrb.mxu0 %v175_v50  ;;  %337 = vmatpush.msrb.mxu2 %v317_v30  ;;  %v311_v36 = vld [vmem:[%s986_s3 + $0x8] sm:$0xff]  ;;  %v310_v37 = vld [vmem:[%s986_s3] sm:$0xff]  ;;  %v361_v41 = vld [vmem:[%s988_s5 + $0x38] sm:$0xff] }
  0x29   :  { %295 = vmatpush.bf16.msrb.mxu1 %v183_v51  ;;  %v487_v39 = vld [vmem:[%s985_s2] ss:$0 sm:$0xff]  ;;  %v360_v42 = vld [vmem:[%s988_s5 + $0x30] sm:$0xff]  ;;  %380 = vmatpush.msrb.mxu3 %v361_v41  ;;  %v359_v43 = vld [vmem:[%s988_s5 + $0x28] sm:$0xff] }
  0x2a   :  { %338 = vmatpush.msrb.mxu2 %v316_v31  ;;  %v358_v45 = vld [vmem:[%s988_s5 + $0x20] sm:$0xff]  ;;  %v357_v46 = vld [vmem:[%s988_s5 + $0x18] sm:$0xff]  ;;  %v356_v49 = vld [vmem:[%s988_s5 + $0x10] sm:$0xff] }
  0x2b   :  { %381 = vmatpush.msrb.mxu3 %v360_v42  ;;  %v355_v7 = vld [vmem:[%s988_s5 + $0x8] sm:$0xff]  ;;  %v403_v10 = vld [vmem:[%s990_s7 + $0x30] sm:$0xff]  ;;  %v401_v12 = vld [vmem:[%s990_s7 + $0x20] sm:$0xff] }
  0x2c   :  { %282 = vmatpush.bf16.msrb.mxu0 %v174_v56  ;;  %339 = vmatpush.msrb.mxu2 %v315_v32  ;;  %v402_v11 = vld [vmem:[%s990_s7 + $0x28] sm:$0xff]  ;;  %v400_v13 = vld [vmem:[%s990_s7 + $0x18] sm:$0xff]  ;;  %v397_v23 = vld [vmem:[%s990_s7] sm:$0xff] }
  0x2d   :  { %296 = vmatpush.bf16.msrb.mxu1 %v182_v57  ;;  %382 = vmatpush.msrb.mxu3 %v359_v43  ;;  %v398_v22 = vld [vmem:[%s990_s7 + $0x8] sm:$0xff]  ;;  %v489_v24 = vld [vmem:[%s989_s6] ss:$0 sm:$0xff] }
  0x2e   :  { %340 = vmatpush.msrb.mxu2 %v314_v33  ;;  %v490_v31 = vld [vmem:[%s991_s8] ss:$0 sm:$0xff] }
  0x2f   :  { %383 = vmatpush.msrb.mxu3 %v358_v45 }
  0x30   :  { %283 = vmatpush.bf16.msrb.mxu0 %v173_v62  ;;  %341 = vmatpush.msrb.mxu2 %v313_v34 }
  0x31   :  { %297 = vmatpush.bf16.msrb.mxu1 %v181_v4  ;;  %384 = vmatpush.msrb.mxu3 %v357_v46 }
  0x32   :  { %342 = vmatpush.msrb.mxu2 %v312_v35 }
  0x33   :  { %385 = vmatpush.msrb.mxu3 %v356_v49 }
  0x34   :  { %284 = vmatpush.bf16.msrb.mxu0 %v172_v8  ;;  %343 = vmatpush.msrb.mxu2 %v311_v36  ;;  %v354_v8 = vld [vmem:[%s988_s5] sm:$0xff] }
  0x35   :  { %298 = vmatpush.bf16.msrb.mxu1 %v180_v9  ;;  %386 = vmatpush.msrb.mxu3 %v355_v7  ;;  %v404_v9 = vld [vmem:[%s990_s7 + $0x38] sm:$0xff] }
  0x36   :  { %344 = vmatpush.msrb.mxu2 %v310_v37 }
  0x37   :  { %387 = vmatpush.msrb.mxu3 %v354_v8 }
  0x38   :  { %285 = vmatpush.bf16.msrb.mxu0 %v171_v14  ;;  %423 = vmatpush.msra.mxu2 %v404_v9  ;;  %v399_v14 = vld [vmem:[%s990_s7 + $0x10] sm:$0xff] }
  0x39   :  { %299 = vmatpush.bf16.msrb.mxu1 %v179_v15  ;;  %v488_v15 = vld [vmem:[%s987_s4] ss:$0 sm:$0xff] }
  0x3a   :  { %424 = vmatpush.msra.mxu2 %v403_v10 }
  0x3c   :  { %286 = vmatpush.bf16.msrb.mxu0 %v170_v20  ;;  %425 = vmatpush.msra.mxu2 %v402_v11 }
  0x3d   :  { %300 = vmatpush.bf16.msrb.mxu1 %v178_v21 }
  0x3e   :  { %426 = vmatpush.msra.mxu2 %v401_v12 }
  0x40   :  { %287 = vmatpush.bf16.msrb.mxu0 %v169_v26  ;;  %427 = vmatpush.msra.mxu2 %v400_v13 }
  0x41   :  { %301 = vmatpush.bf16.msrb.mxu1 %v177_v27 }
  0x42   :  { %428 = vmatpush.msra.mxu2 %v399_v14 }
  0x43   :  { %288 = vmatmul.bf16.vlgmr.msrb.gmra.mxu0 %v216_v28 }
  0x44   :  { %302 = vmatmul.bf16.vlgmr.msrb.gmra.mxu1 %v217_v29  ;;  %429 = vmatpush.msra.mxu2 %v398_v22 }
  0x46   :  { %430 = vmatpush.msra.mxu2 %v397_v23 }
  0xa3   :  { %v233_v38 = vpop.f32.mrf.mxu0 }
  0xa4   :  { %v247_v40 = vpop.f32.mrf.mxu1  ;;  %v234_v44 = vadd.f32 %v487_v39, %v233_v38 }
  0xa6   :  { %v248_v48 = vadd.f32 %v247_v40, %v234_v44 }
  0xa9   :  { %v261_v47 = vpop.f32.mrf.mxu2 }
  0xaa   :  { %v275_v52 = vpop.f32.mrf.mxu3  ;;  %v262_v53 = vadd.f32 %v261_v47, %v248_v48 }
  0xab   :  { %v235_v50 = vpop.f32.mrf.mxu0 }
  0xac   :  { %v249_v51 = vpop.f32.mrf.mxu1  ;;  %v236_v54 = vadd.f32 %v487_v39, %v235_v50  ;;  %v276_v55 = vadd.f32 %v275_v52, %v262_v53 }
  0xae   :  { %v250_v56 = vadd.f32 %v249_v51, %v236_v54 }
  0xb1   :  { %v263_v57 = vpop.f32.mrf.mxu2 }
  0xb2   :  { %v264_v61 = vadd.f32 %v263_v57, %v250_v56  ;;  %v277_v63 = vpop.f32.mrf.mxu3 }
  0xb4   :  { %v278_v1 = vadd.f32 %v277_v63, %v264_v61 }
  0xc0   :  { %v289_v58 = vpop.f32.mrf.mxu0 }
  0xc1   :  { %v290_v59 = vadd.f32 %v289_v58, %v276_v55  ;;  %v303_v60 = vpop.f32.mrf.mxu1 }
  0xc3   :  { %v304_v62 = vadd.f32 %v303_v60, %v290_v59 }
  0xc5   :  { %v308_v0 = vmax.f32 %v304_v62, 0.0 }
  0xc7   :  { %478 = vmatmul.msk.f32.vlgmr.msrb.gmra.mxu2 %vm322_vm0, %v308_v0 }
  0xc8   :  { %v291_v2 = vpop.f32.mrf.mxu0 }
  0xc9   :  { %v292_v3 = vadd.f32 %v291_v2, %v278_v1  ;;  %v305_v4 = vpop.f32.mrf.mxu1 }
  0xcb   :  { %v306_v5 = vadd.f32 %v305_v4, %v292_v3 }
  0xcd   :  { %v309_v6 = vmax.f32 %v306_v5, 0.0 }
  0xcf   :  { %479 = vmatmul.msk.f32.gmra.mxu2 %vm322_vm0, %v309_v6 }
 0x14a   :  { %v346_v16 = vpop.f32.mrf.mxu2 }
 0x14b   :  { %v347_v17 = vadd.f32 %v488_v15, %v346_v16 }
 0x14d   :  { %v352_v18 = vmax.f32 %v347_v17, 0.0 }
 0x14f   :  { %480 = vmatmul.msk.f32.vlgmr.msrb.gmra.mxu3 %vm322_vm0, %v352_v18 }
 0x152   :  { %v349_v19 = vpop.f32.mrf.mxu2 }
 0x153   :  { %v350_v20 = vadd.f32 %v488_v15, %v349_v19 }
 0x155   :  { %v353_v21 = vmax.f32 %v350_v20, 0.0 }
 0x157   :  { %481 = vmatmul.msk.f32.gmra.mxu3 %vm322_vm0, %v353_v21 }
 0x1d2   :  { %v389_v25 = vpop.f32.mrf.mxu3 }
 0x1d3   :  { %v390_v26 = vadd.f32 %v489_v24, %v389_v25 }
 0x1d5   :  { %v395_v27 = vmax.f32 %v390_v26, 0.0 }
 0x1d7   :  { %482 = vmatmul.msk.f32.vlgmr.msra.gmra.mxu2 %vm322_vm0, %v395_v27 }
 0x1da   :  { %v392_v28 = vpop.f32.mrf.mxu3 }
 0x1db   :  { %v393_v29 = vadd.f32 %v489_v24, %v392_v28 }
 0x1dd   :  { %v396_v30 = vmax.f32 %v393_v29, 0.0 }
 0x1df   :  { %483 = vmatmul.msk.f32.gmra.mxu2 %vm322_vm0, %v396_v30 }
 0x25a   :  { %v432_v32 = vpop.f32.mrf.mxu2 }
 0x25b   :  { %v433_v33 = vadd.f32 %v490_v31, %v432_v32 }
 0x25d   :  { %438 = vmax.xlane.f32.xlu0 %v433_v33 }
 0x262   :  { %v435_v34 = vpop.f32.mrf.mxu2 }
 0x263   :  { %v436_v35 = vadd.f32 %v490_v31, %v435_v34 }
 0x265   :  { %440 = vmax.xlane.f32.xlu0 %v436_v35 }
 0x2d0   :  { %v439_v36 = vpop.xlane.xlu0 %438 }
 0x2d1   :  { %v442_v37 = vsub.f32 %v433_v33, %v439_v36 }
 0x2d3   :  { %v444_v38 = vmul.f32 1.442695, %v442_v37 }
 0x2d5   :  { %491 = vpow2.f32 %v444_v38 }
 0x2d8   :  { %v441_v39 = vpop.xlane.xlu0 %440 }
 0x2d9   :  { %v443_v40 = vsub.f32 %v436_v35, %v441_v39 }
 0x2db   :  { %v492_v41 = vpop.eup %491  ;;  %v446_v42 = vmul.f32 1.442695, %v443_v40 }
 0x2dc   :  { %448 = vadd.xlane.f32.xlu1 %v492_v41 }
 0x2dd   :  { %493 = vpow2.f32 %v446_v42 }
 0x2e3   :  { %v494_v43 = vpop.eup %493 }
 0x2e4   :  { %450 = vadd.xlane.f32.xlu1 %v494_v43 }
 0x34f   :  { %v449_v44 = vpop.xlane.xlu1 %448 }
 0x350   :  { %495 = vlog2.f32 %v449_v44 }
 0x356   :  { %v496_v45 = vpop.eup %495 }
 0x357   :  { %v453_v46 = vmul.f32 0.6931472, %v496_v45  ;;  %v451_v47 = vpop.xlane.xlu1 %450 }
 0x358   :  { %497 = vlog2.f32 %v451_v47 }
 0x359   :  { %v456_v48 = vsub.f32 %v442_v37, %v453_v46 }
 0x35b   :  { %458 = vst [vmem:[#allocation2] sm:$0xff] %v456_v48 }
 0x35e   :  { %v498_v49 = vpop.eup %497 }
 0x35f   :  { %v455_v50 = vmul.f32 0.6931472, %v498_v49 }
 0x361   :  { %v457_v51 = vsub.f32 %v443_v40, %v455_v50 }
 0x363   :  { %459 = vst [vmem:[#allocation2 + $0x8] sm:$0xff] %v457_v51 }
 0x364   :  { %463 = vsyncadd [#allocation3], 224  ;;  %s466_s8 = sshll.u32 %s992_s9, 4  ;;  %s525_s1 = smov [#allocation2]   ;;  %s467_s8 = int_to_ptr.hbm [resolvable:$true] %s466_s8 }
 0x365   :  { %s464_s29 = sshll.u32 %s525_s1, 4  ;;  %s526_s30 = smov 32   ;;  %s465_s29 = int_to_ptr.vmem [resolvable:$true] %s464_s29 }
 0x366   :  { %s527_s10 = smov 2  }
 0x367   :  { %472 = dma.vmem_to_hbm [thread:$0]  %s465_s29, 32, %s467_s8, [#allocation3], %s526_s30, %s526_s30, %s527_s10  }
 0x368   :  { %523 = dma.done.wait [#allocation3], 256  }
 0x369   :  { %524 = vsyncadd [#allocation3], 4294967040 }
 0x36a   :  { %477 = vsyncpa [#allocation3], 1 }

</bundles_post_ra>
